<compile_context>
chip_gen: v5e
topology: v5e:2x2
jax: 0.10.0
libtpu: 0.0.40
codegen_flags: <defaults>
</compile_context>

<pallas_src>
import jax
import jax.numpy as jnp
from jax.experimental import pallas as pl
from jax.experimental.pallas import tpu as pltpu


def _round_up(x, m):
    return (x + m - 1) // m * m


def _vmem_capacity_bytes():
    """Generation-aware physical VMEM size; conservative fallback (v7x)."""
    try:
        info = pltpu.get_tpu_info()
        cap = getattr(info, "vmem_capacity_bytes", None)
        if cap:
            return int(cap)
    except Exception:
        pass
    return 64 * 1024 * 1024


def _ffn_vmem_bytes(tm, kp, th, np_, out_bytes=4):
    """Conservative VMEM estimate for one grid step of the fused FFN kernel.

    Counts the default two pipeline buffers for every streamed operand, the
    f32 accumulator scratch, and the in-body hidden-tile temporaries
    (f32 result + bf16 copy for the second MXU pass).
    """
    b = 0
    b += 2 * tm * kp * 2          # x tile (bf16), double-buffered
    b += 2 * kp * th * 2          # w1 tile (bf16), double-buffered
    b += 2 * 8 * th * 4           # b1 tile (f32, padded to 8 sublanes)
    b += 2 * th * np_ * 2         # w2 tile (bf16), double-buffered
    b += 2 * 8 * np_ * 4          # b2 tile
    b += 2 * tm * np_ * out_bytes  # out tile, double-buffered
    b += tm * np_ * 4             # accumulator scratch
    b += tm * th * (4 + 2)        # hidden tile temporaries (f32 + bf16)
    return b


def _pick_hidden_tile(tm, kp, hp, np_, budget, max_hidden_tile=None):
    """Largest multiple of 128 dividing Hp that fits the VMEM budget."""
    cap = hp if max_hidden_tile is None else max(128, min(hp, max_hidden_tile))
    cands = [t for t in range(hp, 0, -128) if hp % t == 0 and t <= cap]
    for t in cands:
        if _ffn_vmem_bytes(tm, kp, t, np_) <= budget:
            return t
    return 128


# ---------------------------------------------------------------------------
# Fused FFN kernel: per grid step (i, h)
#   h_tile = relu(x[i] @ w1[:, h] + b1[h])        (f32)
#   acc   += h_tile.bf16 @ w2[h, :]               (f32 accumulator over h)
#   on last h: out[i] = acc + b2
# ---------------------------------------------------------------------------
def _ffn_kernel(x_ref, w1_ref, b1_ref, w2_ref, b2_ref, o_ref, acc_ref):
    h_idx = pl.program_id(1)

    @pl.when(h_idx == 0)
    def _():
        acc_ref[...] = jnp.zeros_like(acc_ref)

    h = jnp.dot(x_ref[...], w1_ref[...], preferred_element_type=jnp.float32)
    h = jnp.maximum(h + b1_ref[...], 0.0)                 # bias + ReLU in f32
    acc_ref[...] += jnp.dot(h.astype(w2_ref.dtype), w2_ref[...],
                            preferred_element_type=jnp.float32)

    @pl.when(h_idx == pl.num_programs(1) - 1)
    def _():
        o_ref[...] = (acc_ref[...] + b2_ref[...]).astype(o_ref.dtype)


# ---------------------------------------------------------------------------
# Parameter preparation (pad + cast ONCE, outside the jitted forward)
# ---------------------------------------------------------------------------
def prepare_params(params):
    """Pad weights/biases to 128-aligned lane-dense layouts and cast once."""
    w1, b1, w2, b2 = params["w1"], params["b1"], params["w2"], params["b2"]
    K, H = w1.shape
    H2, N = w2.shape
    assert H == H2 and b1.shape == (H,) and b2.shape == (N,)
    Kp, Hp, Np = _round_up(K, 128), _round_up(H, 128), _round_up(N, 128)

    def pad2(a, r, c):
        return a if a.shape == (r, c) else jnp.pad(
            a, ((0, r - a.shape[0]), (0, c - a.shape[1])))

    def pad1(a, n):
        return a if a.shape[0] == n else jnp.pad(a, (0, n - a.shape[0]))

    return {
        "w1": pad2(w1, Kp, Hp).astype(jnp.bfloat16),
        "b1": pad1(b1, Hp).reshape(1, Hp).astype(jnp.float32),
        "w2": pad2(w2, Hp, Np).astype(jnp.bfloat16),
        "b2": pad1(b2, Np).reshape(1, Np).astype(jnp.float32),
    }


# ---------------------------------------------------------------------------
# FeedForward forward pass (expects prepared params)
# ---------------------------------------------------------------------------
def feed_forward(prepared, x, *, out_dim, tm=256, max_hidden_tile=None,
                 out_dtype=jnp.float32):
    """y = Linear2(ReLU(Linear1(x))); dropout (p=0.0 / eval) is identity."""
    w1, b1, w2, b2 = prepared["w1"], prepared["b1"], prepared["w2"], prepared["b2"]
    Kp, Hp = w1.shape
    Np = w2.shape[1]
    N = out_dim

    dim = x.shape[-1]
    assert dim <= Kp
    x2 = x.reshape(-1, dim)
    M = x2.shape[0]

    # -------- static tile selection --------
    tm = min(tm, _round_up(M, 16))                       # bf16 sublane packing
    # v7x has 2 TensorCores sharded over the "parallel" M axis: prefer >=2 tiles.
    if _round_up(M, tm) // tm < 2 and tm > 16:
        tm = max(16, _round_up((M + 1) // 2, 16))

    vmem_cap = _vmem_capacity_bytes()
    vmem_limit = int(min(vmem_cap * 3 // 4, 96 * 1024 * 1024))
    tile_budget = max(vmem_limit - 8 * 1024 * 1024, vmem_limit // 2)

    th = _pick_hidden_tile(tm, Kp, Hp, Np, tile_budget, max_hidden_tile)
    while _ffn_vmem_bytes(tm, Kp, th, Np) > tile_budget and tm > 16:
        tm = max(16, _round_up(tm // 2, 16))
        th = _pick_hidden_tile(tm, Kp, Hp, Np, tile_budget, max_hidden_tile)

    Mp = _round_up(M, tm)
    n_m, n_h = Mp // tm, Hp // th

    # -------- activation pad/cast (only when needed) --------
    xb = x2
    if xb.shape != (Mp, Kp):
        xb = jnp.pad(xb, ((0, Mp - M), (0, Kp - dim)))
    if xb.dtype != jnp.bfloat16:
        xb = xb.astype(jnp.bfloat16)

    flops = 2 * Mp * Hp * Kp + 2 * Mp * Np * Hp
    bytes_accessed = (Mp * Kp * 2                      # x (read once per M tile)
                      + n_m * (Kp * Hp + Hp * Np) * 2  # weights, streamed per M tile
                      + (Hp + Np) * 4                  # biases
                      + Mp * Np * jnp.dtype(out_dtype).itemsize)

    out = pl.pallas_call(
        _ffn_kernel,
        out_shape=jax.ShapeDtypeStruct((Mp, Np), out_dtype),
        grid_spec=pltpu.PrefetchScalarGridSpec(
            num_scalar_prefetch=0,
            grid=(n_m, n_h),
            in_specs=[
                pl.BlockSpec((tm, Kp), lambda i, h: (i, 0)),
                pl.BlockSpec((Kp, th), lambda i, h: (0, h)),
                pl.BlockSpec((1, th), lambda i, h: (0, h)),
                pl.BlockSpec((th, Np), lambda i, h: (h, 0)),
                pl.BlockSpec((1, Np), lambda i, h: (0, 0)),
            ],
            out_specs=pl.BlockSpec((tm, Np), lambda i, h: (i, 0)),
            scratch_shapes=[pltpu.VMEM((tm, Np), jnp.float32)],
        ),
        compiler_params=pltpu.CompilerParams(
            dimension_semantics=("parallel", "arbitrary"),
            vmem_limit_bytes=vmem_limit),
        cost_estimate=pl.CostEstimate(
            flops=int(flops), transcendentals=0,
            bytes_accessed=int(bytes_accessed)),
    )(xb, w1, b1, w2, b2)

    if (Mp, Np) != (M, N):
        out = out[:M, :N]
    return out.reshape(*x.shape[:-1], N)


def feed_forward_ref(params, x):
    """Pure-JAX reference with the same bf16-operand / f32-accumulate math."""
    w1 = params["w1"].astype(jnp.bfloat16)
    w2 = params["w2"].astype(jnp.bfloat16)
    h = jnp.dot(x.astype(jnp.bfloat16), w1,
                preferred_element_type=jnp.float32) + params["b1"]
    h = jnp.maximum(h, 0.0).astype(jnp.bfloat16)
    y = jnp.dot(h, w2, preferred_element_type=jnp.float32) + params["b2"]
    return y


# ---------------------------------------------------------------------------
# Parameters (PyTorch nn.Linear-style init; weights stored as (in, out))
# ---------------------------------------------------------------------------
def init_params(key, dim, hidden_dim):
    k1, k2, k3, k4 = jax.random.split(key, 4)
    lim1 = dim ** -0.5
    lim2 = hidden_dim ** -0.5
    return dict(
        w1=jax.random.uniform(k1, (dim, hidden_dim), jnp.float32, -lim1, lim1),
        b1=jax.random.uniform(k2, (hidden_dim,), jnp.float32, -lim1, lim1),
        w2=jax.random.uniform(k3, (hidden_dim, dim), jnp.float32, -lim2, lim2),
        b2=jax.random.uniform(k4, (dim,), jnp.float32, -lim2, lim2),
    )


# ---------------------------------------------------------------------------
if __name__ == "__main__":
    key = jax.random.PRNGKey(0)
    kx1, kp1, kx2, kp2 = jax.random.split(key, 4)

    fwd = jax.jit(feed_forward,
                  static_argnames=("out_dim", "tm", "max_hidden_tile",
                                   "out_dtype"))

    # Test 1: small FFN (dim=32, hidden=2*dim) -> weights fully resident,
    # single hidden tile, single M tile.
    B, S, dim, hidden_dim = 2, 8, 32, 64
    x = jax.random.normal(kx1, (B, S, dim), jnp.float32)
    params = init_params(kp1, dim, hidden_dim)
    prepared = prepare_params(params)                 # pad/cast once, outside jit
    out = jax.block_until_ready(fwd(prepared, x, out_dim=dim))
    ref = feed_forward_ref(params, x)
    assert out.shape == (B, S, dim)
    assert jnp.allclose(out, ref, rtol=5e-3, atol=5e-3)

    # Test 2: exercise the hidden-tiled accumulation path and a 2-tile
    # parallel M axis (grid = (2, 2)).
    B2, S2, dim2, hidden2 = 2, 16, 64, 256
    x2 = jax.random.normal(kx2, (B2, S2, dim2), jnp.float32)
    params2 = init_params(kp2, dim2, hidden2)
    prepared2 = prepare_params(params2)
    out2 = jax.block_until_ready(
        fwd(prepared2, x2, out_dim=dim2, tm=16, max_hidden_tile=128))
    ref2 = feed_forward_ref(params2, x2)
    assert out2.shape == (B2, S2, dim2)
    assert jnp.allclose(out2, ref2, rtol=5e-3, atol=5e-3)

    print("KERNEL_OK")
</pallas_src>

<mosaic_0001>
module attributes {stable_mosaic.version = 11 : i64} {
  func.func @_ffn_kernel(%arg0: i32, %arg1: i32, %arg2: memref<16x128xbf16, #tpu.memory_space<vmem>>, %arg3: memref<128x128xbf16, #tpu.memory_space<vmem>>, %arg4: memref<1x128xf32, #tpu.memory_space<vmem>>, %arg5: memref<128x128xbf16, #tpu.memory_space<vmem>>, %arg6: memref<1x128xf32, #tpu.memory_space<vmem>>, %arg7: memref<16x128xf32, #tpu.memory_space<vmem>>, %arg8: memref<16x128xf32, #tpu.memory_space<vmem>>) attributes {dimension_semantics = [#tpu.dimension_semantics<parallel>, #tpu.dimension_semantics<arbitrary>], iteration_bounds = array<i64: 1, 1>, scalar_prefetch = 0 : i64, scratch_operands = 1 : i64, tpu.core_type = #tpu.core_type<tc>, window_params = [{transform_indices = @transform_0, window_bounds = array<i64: 16, 128>}, {transform_indices = @transform_1, window_bounds = array<i64: 128, 128>}, {transform_indices = @transform_2, window_bounds = array<i64: 1, 128>}, {transform_indices = @transform_3, window_bounds = array<i64: 128, 128>}, {pipeline_mode = #tpu.pipeline_mode<synchronous>, transform_indices = @transform_4, window_bounds = array<i64: 1, 128>}, {transform_indices = @transform_5, window_bounds = array<i64: 16, 128>}]} {
    %c0_i32 = arith.constant 0 : i32
    %0 = arith.cmpi eq, %arg1, %c0_i32 : i32
    %1 = arith.extui %0 : i1 to i32
    %c0_i32_0 = arith.constant 0 : i32
    %2 = arith.cmpi ne, %1, %c0_i32_0 : i32
    scf.if %2 {
      %cst_16 = arith.constant 0.000000e+00 : f32
      %20 = vector.broadcast %cst_16 : f32 to vector<16x128xf32>
      %c0_17 = arith.constant 0 : index
      %c0_18 = arith.constant 0 : index
      %21 = vector.load %arg8[%c0_17, %c0_18] : memref<16x128xf32, #tpu.memory_space<vmem>>, vector<16x128xf32>
      tpu.vector_store %arg8[%c0_17, %c0_18], %20 {strides = array<i32>} : memref<16x128xf32, #tpu.memory_space<vmem>>, vector<16x128xf32>,
    } else {
    }
    %c0 = arith.constant 0 : index
    %c0_1 = arith.constant 0 : index
    %3 = vector.load %arg2[%c0, %c0_1] : memref<16x128xbf16, #tpu.memory_space<vmem>>, vector<16x128xbf16>
    %c0_2 = arith.constant 0 : index
    %c0_3 = arith.constant 0 : index
    %4 = vector.load %arg3[%c0_2, %c0_3] : memref<128x128xbf16, #tpu.memory_space<vmem>>, vector<128x128xbf16>
    %cst = arith.constant dense<0.000000e+00> : vector<16x128xf32>
    %5 = tpu.matmul %3, %4, %cst {dimension_numbers = #tpu.dot_dimension_numbers<[1], [0], [0], [1], [0, 0, 1, 1], [], []>} : vector<16x128xbf16>, vector<128x128xbf16>, vector<16x128xf32> -> vector<16x128xf32>
    %c0_4 = arith.constant 0 : index
    %c0_5 = arith.constant 0 : index
    %6 = vector.load %arg4[%c0_4, %c0_5] : memref<1x128xf32, #tpu.memory_space<vmem>>, vector<1x128xf32>
    %7 = vector.broadcast %6 : vector<1x128xf32> to vector<16x128xf32>
    %8 = arith.addf %5, %7 : vector<16x128xf32>
    %cst_6 = arith.constant 0.000000e+00 : f32
    %9 = vector.broadcast %cst_6 : f32 to vector<16x128xf32>
    %10 = arith.maximumf %8, %9 : vector<16x128xf32>
    %c0_7 = arith.constant 0 : index
    %c0_8 = arith.constant 0 : index
    %11 = vector.load %arg8[%c0_7, %c0_8] : memref<16x128xf32, #tpu.memory_space<vmem>>, vector<16x128xf32>
    %12 = arith.truncf %10 : vector<16x128xf32> to vector<16x128xbf16>
    %c0_9 = arith.constant 0 : index
    %c0_10 = arith.constant 0 : index
    %13 = vector.load %arg5[%c0_9, %c0_10] : memref<128x128xbf16, #tpu.memory_space<vmem>>, vector<128x128xbf16>
    %cst_11 = arith.constant dense<0.000000e+00> : vector<16x128xf32>
    %14 = tpu.matmul %12, %13, %cst_11 {dimension_numbers = #tpu.dot_dimension_numbers<[1], [0], [0], [1], [0, 0, 1, 1], [], []>} : vector<16x128xbf16>, vector<128x128xbf16>, vector<16x128xf32> -> vector<16x128xf32>
    %15 = arith.addf %11, %14 : vector<16x128xf32>
    %c0_12 = arith.constant 0 : index
    %c0_13 = arith.constant 0 : index
    %16 = vector.load %arg8[%c0_12, %c0_13] : memref<16x128xf32, #tpu.memory_space<vmem>>, vector<16x128xf32>
    tpu.vector_store %arg8[%c0_12, %c0_13], %15 {strides = array<i32>} : memref<16x128xf32, #tpu.memory_space<vmem>>, vector<16x128xf32>,
    %c0_i32_14 = arith.constant 0 : i32
    %17 = arith.cmpi eq, %arg1, %c0_i32_14 : i32
    %18 = arith.extui %17 : i1 to i32
    %c0_i32_15 = arith.constant 0 : i32
    %19 = arith.cmpi ne, %18, %c0_i32_15 : i32
    scf.if %19 {
      %c0_16 = arith.constant 0 : index
      %c0_17 = arith.constant 0 : index
      %20 = vector.load %arg8[%c0_16, %c0_17] : memref<16x128xf32, #tpu.memory_space<vmem>>, vector<16x128xf32>
      %c0_18 = arith.constant 0 : index
      %c0_19 = arith.constant 0 : index
      %21 = vector.load %arg6[%c0_18, %c0_19] : memref<1x128xf32, #tpu.memory_space<vmem>>, vector<1x128xf32>
      %22 = vector.broadcast %21 : vector<1x128xf32> to vector<16x128xf32>
      %23 = arith.addf %20, %22 : vector<16x128xf32>
      %c0_20 = arith.constant 0 : index
      %c0_21 = arith.constant 0 : index
      %24 = vector.load %arg7[%c0_20, %c0_21] : memref<16x128xf32, #tpu.memory_space<vmem>>, vector<16x128xf32>
      tpu.vector_store %arg7[%c0_20, %c0_21], %23 {strides = array<i32>} : memref<16x128xf32, #tpu.memory_space<vmem>>, vector<16x128xf32>,
    } else {
    }
    return
  }
  func.func @transform_0(%arg0: i32, %arg1: i32) -> (i32, i32) {
    %c0_i32 = arith.constant 0 : i32
    %c0_i32_0 = arith.constant 0 : i32
    return %arg0, %c0_i32 : i32, i32
  }
  func.func @transform_1(%arg0: i32, %arg1: i32) -> (i32, i32) {
    %c0_i32 = arith.constant 0 : i32
    %c0_i32_0 = arith.constant 0 : i32
    return %c0_i32, %arg1 : i32, i32
  }
  func.func @transform_2(%arg0: i32, %arg1: i32) -> (i32, i32) {
    %c0_i32 = arith.constant 0 : i32
    %c0_i32_0 = arith.constant 0 : i32
    return %c0_i32, %arg1 : i32, i32
  }
  func.func @transform_3(%arg0: i32, %arg1: i32) -> (i32, i32) {
    %c0_i32 = arith.constant 0 : i32
    %c0_i32_0 = arith.constant 0 : i32
    return %arg1, %c0_i32 : i32, i32
  }
  func.func @transform_4(%arg0: i32, %arg1: i32) -> (i32, i32) {
    %c0_i32 = arith.constant 0 : i32
    %c0_i32_0 = arith.constant 0 : i32
    %c0_i32_1 = arith.constant 0 : i32
    return %c0_i32, %c0_i32_0 : i32, i32
  }
  func.func @transform_5(%arg0: i32, %arg1: i32) -> (i32, i32) {
    %c0_i32 = arith.constant 0 : i32
    %c0_i32_0 = arith.constant 0 : i32
    return %arg0, %c0_i32 : i32, i32
  }
}

</mosaic_0001>

<bundles_post_ra>
// kernel: feed_forward.1
= control target key start
LH: loop header
LB: loop body
LE: loop exit
PB: predicated region body
PF: predicated region fallthrough
CT: control target
= control target key end

     0   :  { %10 = vsyncpa [#allocation4], 0  ;;  %s452_s0 = inlined_call_operand.vmem [shape: bf16[16,128], index: 0, kind: input, shape index: {}]   ;;  %s453_s1 = inlined_call_operand.hbm [shape: bf16[128,128], index: 1, kind: input, shape index: {}]   ;;  %s454_s2 = inlined_call_operand.vmem [shape: f32[1,128], index: 2, kind: input, shape index: {}]   ;;  %s455_s3 = inlined_call_operand.hbm [shape: bf16[128,128], index: 3, kind: input, shape index: {}]   ;;  %s456_s4 = inlined_call_operand.vmem [shape: f32[1,128], index: 4, kind: input, shape index: {}]   ;;  %s457_s5 = inlined_call_operand.vmem [shape: f32[16,128], index: 5, kind: output, shape index: {}]  }
   0x1   :  { %s18_s20 = sshll.u32 %s453_s1, 4  ;;  %s19_s20 = int_to_ptr.hbm [resolvable:$true] %s18_s20 }
   0x2   :  { %11 = vsyncpa [#allocation6], 0  ;;  %s397_s21 = smov [#allocation3]   ;;  %s33_s25 = sshll.u32 %s455_s3, 4  ;;  %s34_s25 = int_to_ptr.hbm [resolvable:$true] %s33_s25 }
   0x3   :  { %s20_s22 = sshll.u32 %s397_s21, 4  ;;  %s398_s26 = smov 64   ;;  %s21_s22 = int_to_ptr.vmem [resolvable:$true] %s20_s22 }
   0x4   :  { %s399_s27 = smov 4   ;;  %s400_s28 = smov [#allocation5]  }
   0x5   :  { %26 = dma.hbm_to_vmem [thread:$0]  %s19_s20, 1024, %s21_s22, [#allocation4], %s398_s26, %s398_s26, %s399_s27  }
   0x6   :  { %s35_s29 = sshll.u32 %s400_s28, 4  ;;  %s36_s29 = int_to_ptr.vmem [resolvable:$true] %s35_s29 }
   0x7   :  { %41 = dma.hbm_to_vmem [thread:$0]  %s34_s25, 1024, %s36_s29, [#allocation6], %s398_s26, %s398_s26, %s399_s27  }
   0x8   :  { %393 = dma.done.wait [#allocation4], 1024  }
   0x9   :  { %394 = vsyncadd [#allocation4], 4294966272 }
   0xa   :  { %395 = dma.done.wait [#allocation6], 1024  }
   0xb   :  { %396 = vsyncadd [#allocation6], 4294966272  ;;  %v330_v0 = vld [vmem:[#allocation3 + $0x38] sm:$0xff]  ;;  %v329_v1 = vld [vmem:[#allocation3 + $0x30] sm:$0xff] }
   0xc   :  { %134 = vmatpush.bf16.msra.mxu0 %v330_v0  ;;  %v338_v2 = vld [vmem:[#allocation5 + $0x38] sm:$0xff]  ;;  %v337_v3 = vld [vmem:[#allocation5 + $0x30] sm:$0xff]  ;;  %v328_v4 = vld [vmem:[#allocation3 + $0x28] sm:$0xff] }
   0xd   :  { %217 = vmatpush.bf16.msra.mxu1 %v338_v2  ;;  %v336_v5 = vld [vmem:[#allocation5 + $0x28] sm:$0xff]  ;;  %v327_v6 = vld [vmem:[#allocation3 + $0x20] sm:$0xff]  ;;  %v326_v8 = vld [vmem:[#allocation3 + $0x18] sm:$0xff] }
   0xe   :  { %v335_v7 = vld [vmem:[#allocation5 + $0x20] sm:$0xff]  ;;  %v325_v9 = vld [vmem:[#allocation3 + $0x10] sm:$0xff]  ;;  %v324_v10 = vld [vmem:[#allocation3 + $0x8] sm:$0xff] }
   0xf   :  { %v323_v11 = vld [vmem:[#allocation3] sm:$0xff]  ;;  %v334_v13 = vld [vmem:[#allocation5 + $0x18] sm:$0xff]  ;;  %v333_v14 = vld [vmem:[#allocation5 + $0x10] sm:$0xff] }
  0x10   :  { %135 = vmatpush.bf16.msra.mxu0 %v329_v1  ;;  %v322_v12 = vld [vmem:[%s452_s0] sm:$0xff]  ;;  %v332_v15 = vld [vmem:[#allocation5 + $0x8] sm:$0xff] }
  0x11   :  { %218 = vmatpush.bf16.msra.mxu1 %v337_v3  ;;  %v331_v16 = vld [vmem:[#allocation5] sm:$0xff] }
  0x12   :  { %v343_v18 = vld [vmem:[%s454_s2] ss:$0 sm:$0xff] }
  0x13   :  { %v344_v25 = vld [vmem:[%s456_s4] ss:$0 sm:$0xff] }
  0x14   :  { %136 = vmatpush.bf16.msra.mxu0 %v328_v4 }
  0x15   :  { %219 = vmatpush.bf16.msra.mxu1 %v336_v5 }
  0x18   :  { %137 = vmatpush.bf16.msra.mxu0 %v327_v6 }
  0x19   :  { %220 = vmatpush.bf16.msra.mxu1 %v335_v7 }
  0x1c   :  { %138 = vmatpush.bf16.msra.mxu0 %v326_v8 }
  0x1d   :  { %221 = vmatpush.bf16.msra.mxu1 %v334_v13 }
  0x20   :  { %139 = vmatpush.bf16.msra.mxu0 %v325_v9 }
  0x21   :  { %222 = vmatpush.bf16.msra.mxu1 %v333_v14 }
  0x24   :  { %140 = vmatpush.bf16.msra.mxu0 %v324_v10 }
  0x25   :  { %223 = vmatpush.bf16.msra.mxu1 %v332_v15 }
  0x28   :  { %141 = vmatpush.bf16.msra.mxu0 %v323_v11 }
  0x29   :  { %224 = vmatpush.bf16.msra.mxu1 %v331_v16 }
  0x2b   :  { %142 = vmatmul.bf16.vlgmr.msra.gmra.mxu0 %v322_v12 }
  0xa8   :  { %v143_v17 = vpop.f32.mrf.mxu0 }
  0xa9   :  { %v144_v19 = vadd.f32 %v343_v18, %v143_v17 }
  0xab   :  { %v148_v22 = vmax.f32 %v144_v19, 0.0 }
  0xb0   :  { %v145_v20 = vpop.f32.mrf.mxu0 }
  0xb1   :  { %v146_v21 = vadd.f32 %v343_v18, %v145_v20 }
  0xb3   :  { %v149_v23 = vmax.f32 %v146_v21, 0.0 }
  0xb5   :  { %v152_v24 = vpack.c.bf16 %v149_v23, %v148_v22 }
  0xb7   :  { %225 = vmatmul.bf16.vlgmr.msra.gmra.mxu1 %v152_v24 }
 0x134   :  { %v226_v26 = vpop.f32.mrf.mxu1 }
 0x135   :  { %v244_v27 = vadd.f32 %v344_v25, %v226_v26 }
 0x137   :  { %246 = vst [vmem:[%s457_s5] sm:$0xff] %v244_v27 }
 0x13c   :  { %v228_v28 = vpop.f32.mrf.mxu1 }
 0x13d   :  { %v245_v29 = vadd.f32 %v344_v25, %v228_v28 }
 0x13f   :  { %247 = vst [vmem:[%s457_s5 + $0x8] sm:$0xff] %v245_v29 }
 0x140   :  { %252 = vsyncpa [#allocation4], 1 }
 0x141   :  { %253 = vsyncpa [#allocation6], 1 }

</bundles_post_ra>
